<compile_context>
chip_gen: v7x
topology: tpu7x:2x2x1
jax: 0.10.0
libtpu: 0.0.40
codegen_flags: <defaults>
</compile_context>

<pallas_src>
import functools

import jax
import jax.numpy as jnp
from jax.experimental import pallas as pl
from jax.experimental.pallas import tpu as pltpu

IN_DIM = 45 * 3      # 135
IN_PAD = 256         # lane-aligned padded K for layer 1
HID = 256
OUT_DIM = 1
TILE_B_MAX = 512     # ~1.3 MB/tile footprint -> safe on v5e/v6e/v7x default VMEM limits


def _round_up(n, m):
    return ((n + m - 1) // m) * m


def mlp_kernel(x_ref,
               w1_ref, b1_ref,
               w2_ref, b2_ref,
               w3_ref, b3_ref,
               w4_ref, b4_ref,
               w5_ref, b5_ref,
               o_ref):
    # x block: (TILE_B, IN_PAD) bf16 (zero-padded columns contribute exactly 0).
    x = x_ref[...]

    # Layer 1: Linear(256_pad -> 256) + ReLU   (bf16 MXU inputs, f32 accumulate)
    h = jnp.dot(x, w1_ref[...], preferred_element_type=jnp.float32) + b1_ref[...]
    h = jnp.maximum(h, 0.0)

    # Layers 2-4: Linear(256 -> 256) + ReLU
    for w_ref, b_ref in ((w2_ref, b2_ref), (w3_ref, b3_ref), (w4_ref, b4_ref)):
        h = jnp.dot(h.astype(jnp.bfloat16), w_ref[...],
                    preferred_element_type=jnp.float32) + b_ref[...]
        h = jnp.maximum(h, 0.0)

    # Layer 5: Linear(256 -> 1), no activation.
    # N=1 matmul wastes the MXU; do it as a VPU broadcast-multiply + lane reduce (f32).
    out = jnp.sum(h * w5_ref[...], axis=-1, keepdims=True) + b5_ref[...]
    o_ref[...] = out.astype(o_ref.dtype)


@functools.partial(jax.jit, static_argnames=("tile_b_max",))
def net_forward(x, params, tile_b_max=TILE_B_MAX):
    """x: (B, 135) float32; params: flat list [w1,b1,...,w5,b5] (canonical f32 layout)."""
    B = x.shape[0]
    w1, b1, w2, b2, w3, b3, w4, b4, w5, b5 = params

    # Lane-align K: pad x columns and w1 rows 135 -> 256 (numerically free).
    x_p = jnp.pad(x, ((0, 0), (0, IN_PAD - IN_DIM))).astype(jnp.bfloat16)
    w1_p = jnp.pad(w1, ((0, IN_PAD - IN_DIM), (0, 0))).astype(jnp.bfloat16)
    w2b = w2.astype(jnp.bfloat16)
    w3b = w3.astype(jnp.bfloat16)
    w4b = w4.astype(jnp.bfloat16)
    w5_row = w5.T  # (1, 256) f32, broadcast row for the VPU reduction

    # Batch tiling: sublane-aligned tile, batch padded host-side to a tile multiple.
    tile_b = min(tile_b_max, _round_up(B, 8))
    b_pad = pl.cdiv(B, tile_b) * tile_b
    if b_pad != B:
        x_p = jnp.pad(x_p, ((0, b_pad - B), (0, 0)))

    def resident(arr):
        # Weights/biases: full-array block, constant index_map -> DMA'd once, stays in VMEM.
        nd = arr.ndim
        return pl.BlockSpec(arr.shape, lambda i, _nd=nd: (0,) * _nd)

    out = pl.pallas_call(
        mlp_kernel,
        out_shape=jax.ShapeDtypeStruct((b_pad, OUT_DIM), jnp.float32),
        grid=(b_pad // tile_b,),
        in_specs=[
            pl.BlockSpec((tile_b, IN_PAD), lambda i: (i, 0)),   # streamed x
            resident(w1_p), resident(b1),
            resident(w2b), resident(b2),
            resident(w3b), resident(b3),
            resident(w4b), resident(b4),
            resident(w5_row), resident(b5),
        ],
        out_specs=pl.BlockSpec((tile_b, OUT_DIM), lambda i: (i, 0)),
        compiler_params=pltpu.CompilerParams(
            dimension_semantics=("parallel",)),   # 2x on v7x's dual TensorCores
    )(x_p, w1_p, b1, w2b, b2, w3b, b3, w4b, b4, w5_row, b5)

    return out[:B]


def init_params(key):
    """Deterministic init mimicking PyTorch nn.Linear default (U[-1/sqrt(fan_in), +])."""
    dims = [(IN_DIM, HID), (HID, HID), (HID, HID), (HID, HID), (HID, OUT_DIM)]
    params = []
    for fan_in, fan_out in dims:
        key, kw, kb = jax.random.split(key, 3)
        bound = 1.0 / jnp.sqrt(fan_in)
        w = jax.random.uniform(kw, (fan_in, fan_out), jnp.float32, -bound, bound)
        b = jax.random.uniform(kb, (1, fan_out), jnp.float32, -bound, bound)
        params += [w, b]
    return params


def reference_forward(x, params):
    """Pure-JAX reference using the same bf16-input / f32-accumulate numerics."""
    w1, b1, w2, b2, w3, b3, w4, b4, w5, b5 = params
    h = x
    for w, b in ((w1, b1), (w2, b2), (w3, b3), (w4, b4)):
        h = jnp.dot(h.astype(jnp.bfloat16), w.astype(jnp.bfloat16),
                    preferred_element_type=jnp.float32) + b
        h = jnp.maximum(h, 0.0)
    return jnp.dot(h, w5, preferred_element_type=jnp.float32) + b5


if __name__ == "__main__":
    key = jax.random.PRNGKey(0)
    key, kx = jax.random.split(key)
    B = 8
    x = jax.random.normal(kx, (B, IN_DIM), jnp.float32)

    params = init_params(key)

    out = net_forward(x, params)
    out = jax.block_until_ready(out)

    ref = reference_forward(x, params)
    assert out.shape == (B, OUT_DIM)
    assert jnp.allclose(out, ref, atol=1e-2, rtol=1e-2), (
        f"max abs err {jnp.max(jnp.abs(out - ref))}")

    print("KERNEL_OK")
</pallas_src>

<mosaic_0001>
module attributes {stable_mosaic.version = 11 : i64} {
  func.func @mlp_kernel(%arg0: i32, %arg1: memref<8x256xbf16, #tpu.memory_space<vmem>>, %arg2: memref<256x256xbf16, #tpu.memory_space<vmem>>, %arg3: memref<1x256xf32, #tpu.memory_space<vmem>>, %arg4: memref<256x256xbf16, #tpu.memory_space<vmem>>, %arg5: memref<1x256xf32, #tpu.memory_space<vmem>>, %arg6: memref<256x256xbf16, #tpu.memory_space<vmem>>, %arg7: memref<1x256xf32, #tpu.memory_space<vmem>>, %arg8: memref<256x256xbf16, #tpu.memory_space<vmem>>, %arg9: memref<1x256xf32, #tpu.memory_space<vmem>>, %arg10: memref<1x256xf32, #tpu.memory_space<vmem>>, %arg11: memref<1x1xf32, #tpu.memory_space<vmem>>, %arg12: memref<8x1xf32, #tpu.memory_space<vmem>>) attributes {dimension_semantics = [#tpu.dimension_semantics<parallel>], iteration_bounds = array<i64: 1>, scalar_prefetch = 0 : i64, scratch_operands = 0 : i64, tpu.core_type = #tpu.core_type<tc>, window_params = [{transform_indices = @transform_0, window_bounds = array<i64: 8, 256>}, {pipeline_mode = #tpu.pipeline_mode<synchronous>, transform_indices = @transform_1, window_bounds = array<i64: 256, 256>}, {pipeline_mode = #tpu.pipeline_mode<synchronous>, transform_indices = @transform_2, window_bounds = array<i64: 1, 256>}, {pipeline_mode = #tpu.pipeline_mode<synchronous>, transform_indices = @transform_3, window_bounds = array<i64: 256, 256>}, {pipeline_mode = #tpu.pipeline_mode<synchronous>, transform_indices = @transform_4, window_bounds = array<i64: 1, 256>}, {pipeline_mode = #tpu.pipeline_mode<synchronous>, transform_indices = @transform_5, window_bounds = array<i64: 256, 256>}, {pipeline_mode = #tpu.pipeline_mode<synchronous>, transform_indices = @transform_6, window_bounds = array<i64: 1, 256>}, {pipeline_mode = #tpu.pipeline_mode<synchronous>, transform_indices = @transform_7, window_bounds = array<i64: 256, 256>}, {pipeline_mode = #tpu.pipeline_mode<synchronous>, transform_indices = @transform_8, window_bounds = array<i64: 1, 256>}, {pipeline_mode = #tpu.pipeline_mode<synchronous>, transform_indices = @transform_9, window_bounds = array<i64: 1, 256>}, {pipeline_mode = #tpu.pipeline_mode<synchronous>, transform_indices = @transform_10, window_bounds = array<i64: 1, 1>}, {transform_indices = @transform_11, window_bounds = array<i64: 8, 1>}]} {
    %c0 = arith.constant 0 : index
    %c0_0 = arith.constant 0 : index
    %0 = vector.load %arg1[%c0, %c0_0] : memref<8x256xbf16, #tpu.memory_space<vmem>>, vector<8x256xbf16>
    %c0_1 = arith.constant 0 : index
    %c0_2 = arith.constant 0 : index
    %1 = vector.load %arg2[%c0_1, %c0_2] : memref<256x256xbf16, #tpu.memory_space<vmem>>, vector<256x256xbf16>
    %cst = arith.constant dense<0.000000e+00> : vector<8x256xf32>
    %2 = tpu.matmul %0, %1, %cst {dimension_numbers = #tpu.dot_dimension_numbers<[1], [0], [0], [1], [0, 0, 1, 1], [], []>} : vector<8x256xbf16>, vector<256x256xbf16>, vector<8x256xf32> -> vector<8x256xf32>
    %c0_3 = arith.constant 0 : index
    %c0_4 = arith.constant 0 : index
    %3 = vector.load %arg3[%c0_3, %c0_4] : memref<1x256xf32, #tpu.memory_space<vmem>>, vector<1x256xf32>
    %4 = vector.broadcast %3 : vector<1x256xf32> to vector<8x256xf32>
    %5 = arith.addf %2, %4 : vector<8x256xf32>
    %cst_5 = arith.constant 0.000000e+00 : f32
    %6 = vector.broadcast %cst_5 : f32 to vector<8x256xf32>
    %7 = arith.maximumf %5, %6 : vector<8x256xf32>
    %8 = arith.truncf %7 : vector<8x256xf32> to vector<8x256xbf16>
    %c0_6 = arith.constant 0 : index
    %c0_7 = arith.constant 0 : index
    %9 = vector.load %arg4[%c0_6, %c0_7] : memref<256x256xbf16, #tpu.memory_space<vmem>>, vector<256x256xbf16>
    %cst_8 = arith.constant dense<0.000000e+00> : vector<8x256xf32>
    %10 = tpu.matmul %8, %9, %cst_8 {dimension_numbers = #tpu.dot_dimension_numbers<[1], [0], [0], [1], [0, 0, 1, 1], [], []>} : vector<8x256xbf16>, vector<256x256xbf16>, vector<8x256xf32> -> vector<8x256xf32>
    %c0_9 = arith.constant 0 : index
    %c0_10 = arith.constant 0 : index
    %11 = vector.load %arg5[%c0_9, %c0_10] : memref<1x256xf32, #tpu.memory_space<vmem>>, vector<1x256xf32>
    %12 = vector.broadcast %11 : vector<1x256xf32> to vector<8x256xf32>
    %13 = arith.addf %10, %12 : vector<8x256xf32>
    %cst_11 = arith.constant 0.000000e+00 : f32
    %14 = vector.broadcast %cst_11 : f32 to vector<8x256xf32>
    %15 = arith.maximumf %13, %14 : vector<8x256xf32>
    %16 = arith.truncf %15 : vector<8x256xf32> to vector<8x256xbf16>
    %c0_12 = arith.constant 0 : index
    %c0_13 = arith.constant 0 : index
    %17 = vector.load %arg6[%c0_12, %c0_13] : memref<256x256xbf16, #tpu.memory_space<vmem>>, vector<256x256xbf16>
    %cst_14 = arith.constant dense<0.000000e+00> : vector<8x256xf32>
    %18 = tpu.matmul %16, %17, %cst_14 {dimension_numbers = #tpu.dot_dimension_numbers<[1], [0], [0], [1], [0, 0, 1, 1], [], []>} : vector<8x256xbf16>, vector<256x256xbf16>, vector<8x256xf32> -> vector<8x256xf32>
    %c0_15 = arith.constant 0 : index
    %c0_16 = arith.constant 0 : index
    %19 = vector.load %arg7[%c0_15, %c0_16] : memref<1x256xf32, #tpu.memory_space<vmem>>, vector<1x256xf32>
    %20 = vector.broadcast %19 : vector<1x256xf32> to vector<8x256xf32>
    %21 = arith.addf %18, %20 : vector<8x256xf32>
    %cst_17 = arith.constant 0.000000e+00 : f32
    %22 = vector.broadcast %cst_17 : f32 to vector<8x256xf32>
    %23 = arith.maximumf %21, %22 : vector<8x256xf32>
    %24 = arith.truncf %23 : vector<8x256xf32> to vector<8x256xbf16>
    %c0_18 = arith.constant 0 : index
    %c0_19 = arith.constant 0 : index
    %25 = vector.load %arg8[%c0_18, %c0_19] : memref<256x256xbf16, #tpu.memory_space<vmem>>, vector<256x256xbf16>
    %cst_20 = arith.constant dense<0.000000e+00> : vector<8x256xf32>
    %26 = tpu.matmul %24, %25, %cst_20 {dimension_numbers = #tpu.dot_dimension_numbers<[1], [0], [0], [1], [0, 0, 1, 1], [], []>} : vector<8x256xbf16>, vector<256x256xbf16>, vector<8x256xf32> -> vector<8x256xf32>
    %c0_21 = arith.constant 0 : index
    %c0_22 = arith.constant 0 : index
    %27 = vector.load %arg9[%c0_21, %c0_22] : memref<1x256xf32, #tpu.memory_space<vmem>>, vector<1x256xf32>
    %28 = vector.broadcast %27 : vector<1x256xf32> to vector<8x256xf32>
    %29 = arith.addf %26, %28 : vector<8x256xf32>
    %cst_23 = arith.constant 0.000000e+00 : f32
    %30 = vector.broadcast %cst_23 : f32 to vector<8x256xf32>
    %31 = arith.maximumf %29, %30 : vector<8x256xf32>
    %c0_24 = arith.constant 0 : index
    %c0_25 = arith.constant 0 : index
    %32 = vector.load %arg10[%c0_24, %c0_25] : memref<1x256xf32, #tpu.memory_space<vmem>>, vector<1x256xf32>
    %33 = vector.broadcast %32 : vector<1x256xf32> to vector<8x256xf32>
    %34 = arith.mulf %31, %33 : vector<8x256xf32>
    %cst_26 = arith.constant dense<0.000000e+00> : vector<8xf32>
    %35 = vector.multi_reduction <add>, %34, %cst_26 [1] : vector<8x256xf32> to vector<8xf32>
    %36 = vector.shape_cast %35 : vector<8xf32> to vector<8x1xf32>
    %c0_27 = arith.constant 0 : index
    %c0_28 = arith.constant 0 : index
    %37 = vector.load %arg11[%c0_27, %c0_28] : memref<1x1xf32, #tpu.memory_space<vmem>>, vector<1x1xf32>
    %38 = vector.broadcast %37 : vector<1x1xf32> to vector<8x1xf32>
    %39 = arith.addf %36, %38 : vector<8x1xf32>
    %c0_29 = arith.constant 0 : index
    %c0_30 = arith.constant 0 : index
    %40 = vector.load %arg12[%c0_29, %c0_30] : memref<8x1xf32, #tpu.memory_space<vmem>>, vector<8x1xf32>
    tpu.vector_store %arg12[%c0_29, %c0_30], %39 {strides = array<i32>} : memref<8x1xf32, #tpu.memory_space<vmem>>, vector<8x1xf32>,
    return
  }
  func.func @transform_0(%arg0: i32) -> (i32, i32) {
    %c0_i32 = arith.constant 0 : i32
    %c0_i32_0 = arith.constant 0 : i32
    return %arg0, %c0_i32 : i32, i32
  }
  func.func @transform_1(%arg0: i32) -> (i32, i32) {
    %c0_i32 = arith.constant 0 : i32
    %c0_i32_0 = arith.constant 0 : i32
    %c0_i32_1 = arith.constant 0 : i32
    return %c0_i32, %c0_i32_0 : i32, i32
  }
  func.func @transform_2(%arg0: i32) -> (i32, i32) {
    %c0_i32 = arith.constant 0 : i32
    %c0_i32_0 = arith.constant 0 : i32
    %c0_i32_1 = arith.constant 0 : i32
    return %c0_i32, %c0_i32_0 : i32, i32
  }
  func.func @transform_3(%arg0: i32) -> (i32, i32) {
    %c0_i32 = arith.constant 0 : i32
    %c0_i32_0 = arith.constant 0 : i32
    %c0_i32_1 = arith.constant 0 : i32
    return %c0_i32, %c0_i32_0 : i32, i32
  }
  func.func @transform_4(%arg0: i32) -> (i32, i32) {
    %c0_i32 = arith.constant 0 : i32
    %c0_i32_0 = arith.constant 0 : i32
    %c0_i32_1 = arith.constant 0 : i32
    return %c0_i32, %c0_i32_0 : i32, i32
  }
  func.func @transform_5(%arg0: i32) -> (i32, i32) {
    %c0_i32 = arith.constant 0 : i32
    %c0_i32_0 = arith.constant 0 : i32
    %c0_i32_1 = arith.constant 0 : i32
    return %c0_i32, %c0_i32_0 : i32, i32
  }
  func.func @transform_6(%arg0: i32) -> (i32, i32) {
    %c0_i32 = arith.constant 0 : i32
    %c0_i32_0 = arith.constant 0 : i32
    %c0_i32_1 = arith.constant 0 : i32
    return %c0_i32, %c0_i32_0 : i32, i32
  }
  func.func @transform_7(%arg0: i32) -> (i32, i32) {
    %c0_i32 = arith.constant 0 : i32
    %c0_i32_0 = arith.constant 0 : i32
    %c0_i32_1 = arith.constant 0 : i32
    return %c0_i32, %c0_i32_0 : i32, i32
  }
  func.func @transform_8(%arg0: i32) -> (i32, i32) {
    %c0_i32 = arith.constant 0 : i32
    %c0_i32_0 = arith.constant 0 : i32
    %c0_i32_1 = arith.constant 0 : i32
    return %c0_i32, %c0_i32_0 : i32, i32
  }
  func.func @transform_9(%arg0: i32) -> (i32, i32) {
    %c0_i32 = arith.constant 0 : i32
    %c0_i32_0 = arith.constant 0 : i32
    %c0_i32_1 = arith.constant 0 : i32
    return %c0_i32, %c0_i32_0 : i32, i32
  }
  func.func @transform_10(%arg0: i32) -> (i32, i32) {
    %c0_i32 = arith.constant 0 : i32
    %c0_i32_0 = arith.constant 0 : i32
    %c0_i32_1 = arith.constant 0 : i32
    return %c0_i32, %c0_i32_0 : i32, i32
  }
  func.func @transform_11(%arg0: i32) -> (i32, i32) {
    %c0_i32 = arith.constant 0 : i32
    %c0_i32_0 = arith.constant 0 : i32
    return %arg0, %c0_i32 : i32, i32
  }
}

</mosaic_0001>

<bundles_post_ra>
// kernel: net_forward.1
= control target key start
LH: loop header
LB: loop body
LE: loop exit
PB: predicated region body
PF: predicated region fallthrough
CT: control target
= control target key end

     0   :  { %vm1067_vm0 = vcmask 7168   ;;  %s1886_s1 = inlined_call_operand.vmem [shape: bf16[256,256], index: 1, kind: input, shape index: {}]   ;;  %s1887_s0 = inlined_call_operand.vmem [shape: bf16[8,256], index: 0, kind: input, shape index: {}]   ;;  %s1888_s3 = inlined_call_operand.vmem [shape: bf16[256,256], index: 3, kind: input, shape index: {}]   ;;  %s1889_s5 = inlined_call_operand.vmem [shape: bf16[256,256], index: 5, kind: input, shape index: {}]   ;;  %s1890_s2 = inlined_call_operand.vmem [shape: f32[1,256], index: 2, kind: input, shape index: {}]   ;;  %s1891_s7 = inlined_call_operand.vmem [shape: bf16[256,256], index: 7, kind: input, shape index: {}]   ;;  %s1892_s4 = inlined_call_operand.vmem [shape: f32[1,256], index: 4, kind: input, shape index: {}]   ;;  %s1893_s6 = inlined_call_operand.vmem [shape: f32[1,256], index: 6, kind: input, shape index: {}]   ;;  %s1894_s10 = inlined_call_operand.<no memory space> [shape: f32[1,1], index: 10, kind: input, shape index: {}]   ;;  %s1895_s8 = inlined_call_operand.vmem [shape: f32[1,256], index: 8, kind: input, shape index: {}]   ;;  %s1896_s9 = inlined_call_operand.vmem [shape: f32[1,256], index: 9, kind: input, shape index: {}]   ;;  %s1897_s11 = inlined_call_operand.vmem [shape: f32[8,1], index: 11, kind: output, shape index: {}]  }
   0x1   :  { %v1204_v0 = vld [vmem:[%s1886_s1 + $0x4] ss:$8 sps:$4 sm:$0xff]   ;;  %v1206_v1 = vld [vmem:[%s1886_s1] ss:$8 sps:$4 sm:$0xff]   ;;  %v1207_v2 = vld [vmem:[%s1886_s1 + $0x14] ss:$8 sps:$4 sm:$0xff]  }
   0x2   :  { %252 = vmatprep.subr.bf16.mxu0 %v1204_v0  ;;  %v1209_v3 = vld [vmem:[%s1886_s1 + $0x10] ss:$8 sps:$4 sm:$0xff]   ;;  %v1210_v4 = vld [vmem:[%s1886_s1 + $0x24] ss:$8 sps:$4 sm:$0xff]   ;;  %v1212_v5 = vld [vmem:[%s1886_s1 + $0x20] ss:$8 sps:$4 sm:$0xff]  }
   0x3   :  { %253 = vmatpush1.bf16.msra.mxu0 %v1206_v1  ;;  %v1213_v6 = vld [vmem:[%s1886_s1 + $0x34] ss:$8 sps:$4 sm:$0xff]   ;;  %v1215_v7 = vld [vmem:[%s1886_s1 + $0x30] ss:$8 sps:$4 sm:$0xff]   ;;  %v1216_v8 = vld [vmem:[%s1886_s1 + $0x44] ss:$8 sps:$4 sm:$0xff]  }
   0x4   :  { %254 = vmatprep.subr.bf16.mxu0 %v1207_v2  ;;  %v1218_v9 = vld [vmem:[%s1886_s1 + $0x40] ss:$8 sps:$4 sm:$0xff]   ;;  %v1219_v10 = vld [vmem:[%s1886_s1 + $0x54] ss:$8 sps:$4 sm:$0xff]   ;;  %v1221_v11 = vld [vmem:[%s1886_s1 + $0x50] ss:$8 sps:$4 sm:$0xff]  }
   0x5   :  { %v1222_v12 = vld [vmem:[%s1886_s1 + $0x64] ss:$8 sps:$4 sm:$0xff]   ;;  %v1224_v13 = vld [vmem:[%s1886_s1 + $0x60] ss:$8 sps:$4 sm:$0xff]   ;;  %v1257_v18 = vld [vmem:[%s1888_s3 + $0x14] ss:$8 sps:$4 sm:$0xff]  }
   0x6   :  { %v1503_v14 = vld [vmem:[%s1887_s0] sm:$0xff]  ;;  %v1225_v19 = vld [vmem:[%s1886_s1 + $0x74] ss:$8 sps:$4 sm:$0xff]   ;;  %v1227_v20 = vld [vmem:[%s1886_s1 + $0x70] ss:$8 sps:$4 sm:$0xff]  }
   0x7   :  { %255 = vmatpush1.bf16.msra.mxu0 %v1209_v3  ;;  %v1074_v15 = vcombine.high %v1503_v14, %v1503_v14  ;;  %v1254_v16 = vld [vmem:[%s1888_s3 + $0x4] ss:$8 sps:$4 sm:$0xff]   ;;  %v1256_v17 = vld [vmem:[%s1888_s3] ss:$8 sps:$4 sm:$0xff]   ;;  %v1259_v21 = vld [vmem:[%s1888_s3 + $0x10] ss:$8 sps:$4 sm:$0xff]   ;;  %v1073_v55 = vcombine.low %v1503_v14, %v1503_v14 }
   0x8   :  { %256 = vmatprep.subr.bf16.mxu0 %v1210_v4  ;;  %501 = vmatprep.subr.bf16.mxu1 %v1254_v16  ;;  %v1260_v22 = vld [vmem:[%s1888_s3 + $0x24] ss:$8 sps:$4 sm:$0xff]   ;;  %v1230_v24 = vld [vmem:[%s1886_s1 + $0x80] ss:$8 sps:$4 sm:$0xff]   ;;  %v1263_v26 = vld [vmem:[%s1888_s3 + $0x34] ss:$8 sps:$4 sm:$0xff]  }
   0x9   :  { %284 = vmatprep.mubr.bf16.mxu0 %v1074_v15  ;;  %502 = vmatpush1.bf16.msra.mxu1 %v1256_v17  ;;  %v1228_v23 = vld [vmem:[%s1886_s1 + $0x84] ss:$8 sps:$4 sm:$0xff]   ;;  %v1262_v25 = vld [vmem:[%s1888_s3 + $0x20] ss:$8 sps:$4 sm:$0xff]   ;;  %v1231_v27 = vld [vmem:[%s1886_s1 + $0x94] ss:$8 sps:$4 sm:$0xff]  }
   0xa   :  { %503 = vmatprep.subr.bf16.mxu1 %v1257_v18  ;;  %v1233_v28 = vld [vmem:[%s1886_s1 + $0x90] ss:$8 sps:$4 sm:$0xff]   ;;  %v1266_v30 = vld [vmem:[%s1888_s3 + $0x44] ss:$8 sps:$4 sm:$0xff]   ;;  %v1236_v32 = vld [vmem:[%s1886_s1 + $0xa0] ss:$8 sps:$4 sm:$0xff]  }
   0xb   :  { %257 = vmatpush1.bf16.msra.mxu0 %v1212_v5  ;;  %v1265_v29 = vld [vmem:[%s1888_s3 + $0x30] ss:$8 sps:$4 sm:$0xff]   ;;  %v1234_v31 = vld [vmem:[%s1886_s1 + $0xa4] ss:$8 sps:$4 sm:$0xff]   ;;  %v1268_v33 = vld [vmem:[%s1888_s3 + $0x40] ss:$8 sps:$4 sm:$0xff]  }
   0xc   :  { %258 = vmatprep.subr.bf16.mxu0 %v1213_v6  ;;  %v1269_v34 = vld [vmem:[%s1888_s3 + $0x54] ss:$8 sps:$4 sm:$0xff]   ;;  %v1271_v36 = vld [vmem:[%s1888_s3 + $0x50] ss:$8 sps:$4 sm:$0xff]   ;;  %v1272_v38 = vld [vmem:[%s1888_s3 + $0x64] ss:$8 sps:$4 sm:$0xff]  }
   0xd   :  { %504 = vmatpush1.bf16.msra.mxu1 %v1259_v21  ;;  %v1237_v35 = vld [vmem:[%s1886_s1 + $0xb4] ss:$8 sps:$4 sm:$0xff]   ;;  %v1239_v37 = vld [vmem:[%s1886_s1 + $0xb0] ss:$8 sps:$4 sm:$0xff]   ;;  %v1240_v39 = vld [vmem:[%s1886_s1 + $0xc4] ss:$8 sps:$4 sm:$0xff]  }
   0xe   :  { %505 = vmatprep.subr.bf16.mxu1 %v1260_v22  ;;  %v1274_v40 = vld [vmem:[%s1888_s3 + $0x60] ss:$8 sps:$4 sm:$0xff]   ;;  %v1275_v42 = vld [vmem:[%s1888_s3 + $0x74] ss:$8 sps:$4 sm:$0xff]   ;;  %v1277_v44 = vld [vmem:[%s1888_s3 + $0x70] ss:$8 sps:$4 sm:$0xff]  }
   0xf   :  { %259 = vmatpush1.bf16.msra.mxu0 %v1215_v7  ;;  %v1242_v41 = vld [vmem:[%s1886_s1 + $0xc0] ss:$8 sps:$4 sm:$0xff]   ;;  %v1243_v43 = vld [vmem:[%s1886_s1 + $0xd4] ss:$8 sps:$4 sm:$0xff]   ;;  %v1245_v45 = vld [vmem:[%s1886_s1 + $0xd0] ss:$8 sps:$4 sm:$0xff]  }
  0x10   :  { %260 = vmatprep.subr.bf16.mxu0 %v1216_v8  ;;  %v1278_v46 = vld [vmem:[%s1888_s3 + $0x84] ss:$8 sps:$4 sm:$0xff]   ;;  %v1280_v48 = vld [vmem:[%s1888_s3 + $0x80] ss:$8 sps:$4 sm:$0xff]   ;;  %v1281_v50 = vld [vmem:[%s1888_s3 + $0x94] ss:$8 sps:$4 sm:$0xff]  }
  0x11   :  { %506 = vmatpush1.bf16.msra.mxu1 %v1262_v25  ;;  %v1246_v47 = vld [vmem:[%s1886_s1 + $0xe4] ss:$8 sps:$4 sm:$0xff]   ;;  %v1248_v49 = vld [vmem:[%s1886_s1 + $0xe0] ss:$8 sps:$4 sm:$0xff]   ;;  %v1249_v51 = vld [vmem:[%s1886_s1 + $0xf4] ss:$8 sps:$4 sm:$0xff]  }
  0x12   :  { %507 = vmatprep.subr.bf16.mxu1 %v1263_v26  ;;  %v1283_v52 = vld [vmem:[%s1888_s3 + $0x90] ss:$8 sps:$4 sm:$0xff]   ;;  %v1284_v54 = vld [vmem:[%s1888_s3 + $0xa4] ss:$8 sps:$4 sm:$0xff]   ;;  %v1286_v56 = vld [vmem:[%s1888_s3 + $0xa0] ss:$8 sps:$4 sm:$0xff]  }
  0x13   :  { %261 = vmatpush1.bf16.msra.mxu0 %v1218_v9  ;;  %v1251_v53 = vld [vmem:[%s1886_s1 + $0xf0] ss:$8 sps:$4 sm:$0xff]   ;;  %v1287_v57 = vld [vmem:[%s1888_s3 + $0xb4] ss:$8 sps:$4 sm:$0xff]   ;;  %v1290_v59 = vld [vmem:[%s1888_s3 + $0xc4] ss:$8 sps:$4 sm:$0xff]  }
  0x14   :  { %262 = vmatprep.subr.bf16.mxu0 %v1219_v10  ;;  %v1289_v58 = vld [vmem:[%s1888_s3 + $0xb0] ss:$8 sps:$4 sm:$0xff]   ;;  %v1292_v60 = vld [vmem:[%s1888_s3 + $0xc0] ss:$8 sps:$4 sm:$0xff]   ;;  %v1293_v61 = vld [vmem:[%s1888_s3 + $0xd4] ss:$8 sps:$4 sm:$0xff]  }
  0x15   :  { %508 = vmatpush1.bf16.msra.mxu1 %v1265_v29  ;;  %v1295_v62 = vld [vmem:[%s1888_s3 + $0xd0] ss:$8 sps:$4 sm:$0xff]   ;;  %v1296_v63 = vld [vmem:[%s1888_s3 + $0xe4] ss:$8 sps:$4 sm:$0xff]   ;;  %v1298_v0 = vld [vmem:[%s1888_s3 + $0xe0] ss:$8 sps:$4 sm:$0xff]  }
  0x16   :  { %509 = vmatprep.subr.bf16.mxu1 %v1266_v30  ;;  %v1299_v1 = vld [vmem:[%s1888_s3 + $0xf4] ss:$8 sps:$4 sm:$0xff]   ;;  %v1301_v2 = vld [vmem:[%s1888_s3 + $0xf0] ss:$8 sps:$4 sm:$0xff]   ;;  %v1302_v3 = vld [vmem:[%s1889_s5] ss:$8 sps:$4 sm:$0xff]  }
  0x17   :  { %263 = vmatpush1.bf16.msra.mxu0 %v1221_v11  ;;  %v1304_v4 = vld [vmem:[%s1889_s5 + $0x4] ss:$8 sps:$4 sm:$0xff]   ;;  %v1307_v5 = vld [vmem:[%s1889_s5 + $0x14] ss:$8 sps:$4 sm:$0xff]   ;;  %v1305_v6 = vld [vmem:[%s1889_s5 + $0x10] ss:$8 sps:$4 sm:$0xff]  }
  0x18   :  { %264 = vmatprep.subr.bf16.mxu0 %v1222_v12  ;;  %v1310_v7 = vld [vmem:[%s1889_s5 + $0x24] ss:$8 sps:$4 sm:$0xff]   ;;  %v1308_v8 = vld [vmem:[%s1889_s5 + $0x20] ss:$8 sps:$4 sm:$0xff]   ;;  %v1313_v9 = vld [vmem:[%s1889_s5 + $0x34] ss:$8 sps:$4 sm:$0xff]  }
  0x19   :  { %510 = vmatpush1.bf16.msra.mxu1 %v1268_v33  ;;  %v1311_v10 = vld [vmem:[%s1889_s5 + $0x30] ss:$8 sps:$4 sm:$0xff]   ;;  %v1316_v11 = vld [vmem:[%s1889_s5 + $0x44] ss:$8 sps:$4 sm:$0xff]   ;;  %v1314_v12 = vld [vmem:[%s1889_s5 + $0x40] ss:$8 sps:$4 sm:$0xff]  }
  0x1a   :  { %511 = vmatprep.subr.bf16.mxu1 %v1269_v34  ;;  %v1317_v14 = vld [vmem:[%s1889_s5 + $0x50] ss:$8 sps:$4 sm:$0xff]   ;;  %v1322_v15 = vld [vmem:[%s1889_s5 + $0x64] ss:$8 sps:$4 sm:$0xff]   ;;  %v1320_v16 = vld [vmem:[%s1889_s5 + $0x60] ss:$8 sps:$4 sm:$0xff]  }
  0x1b   :  { %265 = vmatpush1.bf16.msra.mxu0 %v1224_v13  ;;  %v1319_v13 = vld [vmem:[%s1889_s5 + $0x54] ss:$8 sps:$4 sm:$0xff]   ;;  %v1323_v18 = vld [vmem:[%s1889_s5 + $0x70] ss:$8 sps:$4 sm:$0xff]   ;;  %v73_v34 = vld [vmem:[%s1890_s2] sm:$0x3] }
  0x1c   :  { %266 = vmatprep.subr.bf16.mxu0 %v1225_v19  ;;  %v1325_v17 = vld [vmem:[%s1889_s5 + $0x74] ss:$8 sps:$4 sm:$0xff]   ;;  %v1328_v19 = vld [vmem:[%s1889_s5 + $0x84] ss:$8 sps:$4 sm:$0xff]   ;;  %v1329_v22 = vld [vmem:[%s1889_s5 + $0x90] ss:$8 sps:$4 sm:$0xff]  }
  0x1d   :  { %512 = vmatpush1.bf16.msra.mxu1 %v1271_v36  ;;  %v1331_v21 = vld [vmem:[%s1889_s5 + $0x94] ss:$8 sps:$4 sm:$0xff]   ;;  %v1335_v26 = vld [vmem:[%s1889_s5 + $0xb0] ss:$8 sps:$4 sm:$0xff]  }
  0x1e   :  { %513 = vmatprep.subr.bf16.mxu1 %v1272_v38  ;;  %v1337_v25 = vld [vmem:[%s1889_s5 + $0xb4] ss:$8 sps:$4 sm:$0xff]   ;;  %v1341_v30 = vld [vmem:[%s1889_s5 + $0xd0] ss:$8 sps:$4 sm:$0xff]  }
  0x1f   :  { %267 = vmatpush1.bf16.msra.mxu0 %v1227_v20  ;;  %v1326_v20 = vld [vmem:[%s1889_s5 + $0x80] ss:$8 sps:$4 sm:$0xff]   ;;  %v1343_v29 = vld [vmem:[%s1889_s5 + $0xd4] ss:$8 sps:$4 sm:$0xff]  }
  0x20   :  { %268 = vmatprep.subr.bf16.mxu0 %v1228_v23  ;;  %v1334_v23 = vld [vmem:[%s1889_s5 + $0xa4] ss:$8 sps:$4 sm:$0xff]  }
  0x21   :  { %514 = vmatpush1.bf16.msra.mxu1 %v1274_v40 }
  0x22   :  { %515 = vmatprep.subr.bf16.mxu1 %v1275_v42 }
  0x23   :  { %269 = vmatpush1.bf16.msra.mxu0 %v1230_v24  ;;  %v1332_v24 = vld [vmem:[%s1889_s5 + $0xa0] ss:$8 sps:$4 sm:$0xff]  }
  0x24   :  { %270 = vmatprep.subr.bf16.mxu0 %v1231_v27  ;;  %v1340_v27 = vld [vmem:[%s1889_s5 + $0xc4] ss:$8 sps:$4 sm:$0xff]  }
  0x25   :  { %516 = vmatpush1.bf16.msra.mxu1 %v1277_v44 }
  0x26   :  { %517 = vmatprep.subr.bf16.mxu1 %v1278_v46 }
  0x27   :  { %271 = vmatpush1.bf16.msra.mxu0 %v1233_v28  ;;  %v1338_v28 = vld [vmem:[%s1889_s5 + $0xc0] ss:$8 sps:$4 sm:$0xff]  }
  0x28   :  { %272 = vmatprep.subr.bf16.mxu0 %v1234_v31  ;;  %v75_v31 = vlaneseq }
  0x29   :  { %518 = vmatpush1.bf16.msra.mxu1 %v1280_v48  ;;  %v1346_v48 = vld [vmem:[%s1889_s5 + $0xe4] ss:$8 sps:$4 sm:$0xff]  }
  0x2a   :  { %519 = vmatprep.subr.bf16.mxu1 %v1281_v50  ;;  %v1349_v50 = vld [vmem:[%s1889_s5 + $0xf4] ss:$8 sps:$4 sm:$0xff]  }
  0x2b   :  { %273 = vmatpush1.bf16.msra.mxu0 %v1236_v32  ;;  %v76_v32 = vshrl.u32 %v75_v31, 7  ;;  %v1397_v31 = vld [vmem:[%s1891_s7 + $0xf4] ss:$8 sps:$4 sm:$0xff]  }
  0x2c   :  { %274 = vmatprep.subr.bf16.mxu0 %v1237_v35 }
  0x2d   :  { %520 = vmatpush1.bf16.msra.mxu1 %v1283_v52  ;;  %v1743_v33 = vsub.s32 0, %v76_v32  ;;  %v1748_v35 = vsub.s32 1, %v76_v32  ;;  %v1350_v52 = vld [vmem:[%s1891_s7] ss:$8 sps:$4 sm:$0xff]   ;;  %v1395_v32 = vld [vmem:[%s1891_s7 + $0xf0] ss:$8 sps:$4 sm:$0xff]  }
  0x2e   :  { %521 = vmatprep.subr.bf16.mxu1 %v1284_v54  ;;  %v1355_v54 = vld [vmem:[%s1891_s7 + $0x14] ss:$8 sps:$4 sm:$0xff]  }
  0x2f   :  { %275 = vmatpush1.bf16.msra.mxu0 %v1239_v37  ;;  %v78_v36 = vrot.slane %v73_v34, %v1743_v33  ;;  %v82_v37 = vrot.slane %v73_v34, %v1748_v35  ;;  %v578_v34 = vld [vmem:[%s1893_s6] sm:$0x3] }
  0x30   :  { %276 = vmatprep.subr.bf16.mxu0 %v1240_v39 }
  0x31   :  { %522 = vmatpush1.bf16.msra.mxu1 %v1286_v56  ;;  %v1358_v56 = vld [vmem:[%s1891_s7 + $0x24] ss:$8 sps:$4 sm:$0xff]  }
  0x32   :  { %523 = vmatprep.subr.bf16.mxu1 %v1287_v57  ;;  %v1356_v57 = vld [vmem:[%s1891_s7 + $0x20] ss:$8 sps:$4 sm:$0xff]  }
  0x33   :  { %277 = vmatpush1.bf16.msra.mxu0 %v1242_v41 }
  0x34   :  { %278 = vmatprep.subr.bf16.mxu0 %v1243_v43 }
  0x35   :  { %524 = vmatpush1.bf16.msra.mxu1 %v1289_v58  ;;  %v1361_v58 = vld [vmem:[%s1891_s7 + $0x34] ss:$8 sps:$4 sm:$0xff]  }
  0x36   :  { %525 = vmatprep.subr.bf16.mxu1 %v1290_v59  ;;  %v1359_v59 = vld [vmem:[%s1891_s7 + $0x30] ss:$8 sps:$4 sm:$0xff]  }
  0x37   :  { %279 = vmatpush1.bf16.msra.mxu0 %v1245_v45 }
  0x38   :  { %280 = vmatprep.subr.bf16.mxu0 %v1246_v47 }
  0x39   :  { %526 = vmatpush1.bf16.msra.mxu1 %v1292_v60  ;;  %v1364_v60 = vld [vmem:[%s1891_s7 + $0x44] ss:$8 sps:$4 sm:$0xff]  }
  0x3a   :  { %527 = vmatprep.subr.bf16.mxu1 %v1293_v61  ;;  %v1362_v61 = vld [vmem:[%s1891_s7 + $0x40] ss:$8 sps:$4 sm:$0xff]  }
  0x3b   :  { %281 = vmatpush1.bf16.msra.mxu0 %v1248_v49  ;;  %v1344_v49 = vld [vmem:[%s1889_s5 + $0xe0] ss:$8 sps:$4 sm:$0xff]  }
  0x3c   :  { %282 = vmatprep.subr.bf16.mxu0 %v1249_v51  ;;  %v1347_v51 = vld [vmem:[%s1889_s5 + $0xf0] ss:$8 sps:$4 sm:$0xff]  }
  0x3d   :  { %528 = vmatpush1.bf16.msra.mxu1 %v1295_v62  ;;  %v1367_v62 = vld [vmem:[%s1891_s7 + $0x54] ss:$8 sps:$4 sm:$0xff]  }
  0x3e   :  { %529 = vmatprep.subr.bf16.mxu1 %v1296_v63  ;;  %v1365_v63 = vld [vmem:[%s1891_s7 + $0x50] ss:$8 sps:$4 sm:$0xff]  }
  0x3f   :  { %283 = vmatpush1.bf16.msra.mxu0 %v1251_v53  ;;  %v1352_v53 = vld [vmem:[%s1891_s7 + $0x4] ss:$8 sps:$4 sm:$0xff]  }
  0x40   :  { %750 = vmatprep.subr.bf16.mxu0 %v1304_v4  ;;  %v1376_v4 = vld [vmem:[%s1891_s7 + $0x84] ss:$8 sps:$4 sm:$0xff]  }
  0x41   :  { %530 = vmatpush1.bf16.msra.mxu1 %v1298_v0  ;;  %v1370_v0 = vld [vmem:[%s1891_s7 + $0x64] ss:$8 sps:$4 sm:$0xff]  }
  0x42   :  { %285 = vmatmul.mubr.bf16.vlgmr.msra.gmra.mrb[0].mxu0 %v1073_v55  ;;  %531 = vmatprep.subr.bf16.mxu1 %v1299_v1  ;;  %v1353_v55 = vld [vmem:[%s1891_s7 + $0x10] ss:$8 sps:$4 sm:$0xff]   ;;  %v1368_v1 = vld [vmem:[%s1891_s7 + $0x60] ss:$8 sps:$4 sm:$0xff]  }
  0x43   :  { %751 = vmatpush1.bf16.msra.mxu0 %v1302_v3  ;;  %v1371_v3 = vld [vmem:[%s1891_s7 + $0x70] ss:$8 sps:$4 sm:$0xff]  }
  0x44   :  { %752 = vmatprep.subr.bf16.mxu0 %v1307_v5  ;;  %v1374_v5 = vld [vmem:[%s1891_s7 + $0x80] ss:$8 sps:$4 sm:$0xff]  }
  0x45   :  { %532 = vmatpush1.bf16.msra.mxu1 %v1301_v2  ;;  %v1373_v2 = vld [vmem:[%s1891_s7 + $0x74] ss:$8 sps:$4 sm:$0xff]  }
  0x46   :  { %999 = vmatprep.subr.bf16.mxu1 %v1352_v53 }
  0x47   :  { %753 = vmatpush1.bf16.msra.mxu0 %v1305_v6  ;;  %v1379_v6 = vld [vmem:[%s1891_s7 + $0x94] ss:$8 sps:$4 sm:$0xff]  }
  0x48   :  { %754 = vmatprep.subr.bf16.mxu0 %v1310_v7  ;;  %v1377_v7 = vld [vmem:[%s1891_s7 + $0x90] ss:$8 sps:$4 sm:$0xff]  }
  0x4b   :  { %755 = vmatpush1.bf16.msra.mxu0 %v1308_v8  ;;  %v1382_v8 = vld [vmem:[%s1891_s7 + $0xa4] ss:$8 sps:$4 sm:$0xff]  }
  0x4c   :  { %756 = vmatprep.subr.bf16.mxu0 %v1313_v9  ;;  %v1380_v9 = vld [vmem:[%s1891_s7 + $0xa0] ss:$8 sps:$4 sm:$0xff]  }
  0x4f   :  { %757 = vmatpush1.bf16.msra.mxu0 %v1311_v10  ;;  %v1385_v10 = vld [vmem:[%s1891_s7 + $0xb4] ss:$8 sps:$4 sm:$0xff]  }
  0x50   :  { %758 = vmatprep.subr.bf16.mxu0 %v1316_v11  ;;  %v1383_v11 = vld [vmem:[%s1891_s7 + $0xb0] ss:$8 sps:$4 sm:$0xff]  }
  0x53   :  { %759 = vmatpush1.bf16.msra.mxu0 %v1314_v12  ;;  %v1388_v12 = vld [vmem:[%s1891_s7 + $0xc4] ss:$8 sps:$4 sm:$0xff]  }
  0x54   :  { %760 = vmatprep.subr.bf16.mxu0 %v1319_v13  ;;  %v1386_v13 = vld [vmem:[%s1891_s7 + $0xc0] ss:$8 sps:$4 sm:$0xff]  }
  0x57   :  { %761 = vmatpush1.bf16.msra.mxu0 %v1317_v14  ;;  %v1391_v14 = vld [vmem:[%s1891_s7 + $0xd4] ss:$8 sps:$4 sm:$0xff]  }
  0x58   :  { %762 = vmatprep.subr.bf16.mxu0 %v1322_v15  ;;  %v1389_v15 = vld [vmem:[%s1891_s7 + $0xd0] ss:$8 sps:$4 sm:$0xff]  }
  0x5b   :  { %763 = vmatpush1.bf16.msra.mxu0 %v1320_v16  ;;  %v329_v16 = vld [vmem:[%s1892_s4] sm:$0x3] }
  0x5c   :  { %764 = vmatprep.subr.bf16.mxu0 %v1325_v17  ;;  %v334_v17 = vrot.slane %v329_v16, %v1743_v33 }
  0x5f   :  { %765 = vmatpush1.bf16.msra.mxu0 %v1323_v18  ;;  %v338_v18 = vrot.slane %v329_v16, %v1748_v35 }
  0x60   :  { %766 = vmatprep.subr.bf16.mxu0 %v1328_v19 }
  0x63   :  { %767 = vmatpush1.bf16.msra.mxu0 %v1326_v20 }
  0x64   :  { %768 = vmatprep.subr.bf16.mxu0 %v1331_v21 }
  0x67   :  { %769 = vmatpush1.bf16.msra.mxu0 %v1329_v22 }
  0x68   :  { %770 = vmatprep.subr.bf16.mxu0 %v1334_v23 }
  0x6b   :  { %771 = vmatpush1.bf16.msra.mxu0 %v1332_v24 }
  0x6c   :  { %772 = vmatprep.subr.bf16.mxu0 %v1337_v25 }
  0x6f   :  { %773 = vmatpush1.bf16.msra.mxu0 %v1335_v26 }
  0x70   :  { %774 = vmatprep.subr.bf16.mxu0 %v1340_v27 }
  0x73   :  { %775 = vmatpush1.bf16.msra.mxu0 %v1338_v28 }
  0x74   :  { %776 = vmatprep.subr.bf16.mxu0 %v1343_v29  ;;  %v1394_v29 = vld [vmem:[%s1891_s7 + $0xe4] ss:$8 sps:$4 sm:$0xff]  }
  0x77   :  { %777 = vmatpush1.bf16.msra.mxu0 %v1341_v30  ;;  %v1392_v30 = vld [vmem:[%s1891_s7 + $0xe0] ss:$8 sps:$4 sm:$0xff]  }
  0x78   :  { %778 = vmatprep.subr.bf16.mxu0 %v1346_v48  ;;  %v16_v48 = vstv %s1894_s10 }
  0x79   :  { %17 = vst [vmem:[#allocation2] sm:$0x1] %v16_v48 }
  0x7b   :  { %779 = vmatpush1.bf16.msra.mxu0 %v1344_v49  ;;  %v827_v49 = vld [vmem:[%s1895_s8] sm:$0x3] }
  0x7c   :  { %780 = vmatprep.subr.bf16.mxu0 %v1349_v50  ;;  %v832_v50 = vrot.slane %v827_v49, %v1743_v33 }
  0x7f   :  { %781 = vmatpush1.bf16.msra.mxu0 %v1347_v51  ;;  %v836_v51 = vrot.slane %v827_v49, %v1748_v35 }
 0x115   :  { %v286_v38 = vpop.f32.mrb[0].mxu0 }
 0x116   :  { %v287_v39 = vadd.f32 %v286_v38, %v78_v36  ;;  %v288_v40 = vpop.f32.mrb[1].mxu0  ;;  %v583_v36 = vrot.slane %v578_v34, %v1743_v33 }
 0x117   :  { %v289_v41 = vadd.f32 %v288_v40, %v82_v37  ;;  %v290_v42 = vpop.f32.mrb[2].mxu0  ;;  %v587_v37 = vrot.slane %v578_v34, %v1748_v35 }
 0x118   :  { %v293_v43 = vmax.f32 %v287_v39, 0.0  ;;  %v291_v44 = vpop.f32.mrb[3].mxu0 }
 0x119   :  { %v294_v45 = vmax.f32 %v289_v41, 0.0 }
 0x11a   :  { %v295_v47 = vpack.c.bf16 %v293_v43, %v293_v43 }
 0x11b   :  { %v296_v46 = vpack.c.bf16 %v294_v45, %v294_v45 }
 0x11d   :  { %533 = vmatprep.mubr.bf16.mxu1 %v296_v46 }
 0x11e   :  { %534 = vmatmul.mubr.bf16.vlgmr.msra.gmra.mrb[0].mxu1 %v295_v47 }
 0x11f   :  { %1000 = vmatpush1.bf16.msra.mxu1 %v1350_v52  ;;  %v1042_v52 = vld [vmem:[%s1896_s9] sm:$0x3] }
 0x120   :  { %1001 = vmatprep.subr.bf16.mxu1 %v1355_v54 }
 0x123   :  { %1002 = vmatpush1.bf16.msra.mxu1 %v1353_v55 }
 0x124   :  { %1003 = vmatprep.subr.bf16.mxu1 %v1358_v56  ;;  %v1047_v56 = vrot.slane %v1042_v52, %v1743_v33 }
 0x127   :  { %1004 = vmatpush1.bf16.msra.mxu1 %v1356_v57 }
 0x128   :  { %1005 = vmatprep.subr.bf16.mxu1 %v1361_v58 }
 0x12b   :  { %1006 = vmatpush1.bf16.msra.mxu1 %v1359_v59  ;;  %v1051_v59 = vrot.slane %v1042_v52, %v1748_v35 }
 0x12c   :  { %1007 = vmatprep.subr.bf16.mxu1 %v1364_v60 }
 0x12f   :  { %1008 = vmatpush1.bf16.msra.mxu1 %v1362_v61 }
 0x130   :  { %1009 = vmatprep.subr.bf16.mxu1 %v1367_v62 }
 0x133   :  { %1010 = vmatpush1.bf16.msra.mxu1 %v1365_v63 }
 0x134   :  { %1011 = vmatprep.subr.bf16.mxu1 %v1370_v0 }
 0x137   :  { %1012 = vmatpush1.bf16.msra.mxu1 %v1368_v1 }
 0x138   :  { %1013 = vmatprep.subr.bf16.mxu1 %v1373_v2  ;;  %v1203_v2 = vld [vmem:[#allocation2] ss:$0 sm:$0xff] }
 0x13b   :  { %1014 = vmatpush1.bf16.msra.mxu1 %v1371_v3 }
 0x13c   :  { %1015 = vmatprep.subr.bf16.mxu1 %v1376_v4 }
 0x13f   :  { %1016 = vmatpush1.bf16.msra.mxu1 %v1374_v5 }
 0x140   :  { %1017 = vmatprep.subr.bf16.mxu1 %v1379_v6 }
 0x143   :  { %1018 = vmatpush1.bf16.msra.mxu1 %v1377_v7 }
 0x144   :  { %1019 = vmatprep.subr.bf16.mxu1 %v1382_v8 }
 0x147   :  { %1020 = vmatpush1.bf16.msra.mxu1 %v1380_v9 }
 0x148   :  { %1021 = vmatprep.subr.bf16.mxu1 %v1385_v10 }
 0x14b   :  { %1022 = vmatpush1.bf16.msra.mxu1 %v1383_v11 }
 0x14c   :  { %1023 = vmatprep.subr.bf16.mxu1 %v1388_v12 }
 0x14f   :  { %1024 = vmatpush1.bf16.msra.mxu1 %v1386_v13 }
 0x150   :  { %1025 = vmatprep.subr.bf16.mxu1 %v1391_v14 }
 0x153   :  { %1026 = vmatpush1.bf16.msra.mxu1 %v1389_v15 }
 0x154   :  { %1027 = vmatprep.subr.bf16.mxu1 %v1394_v29 }
 0x157   :  { %1028 = vmatpush1.bf16.msra.mxu1 %v1392_v30 }
 0x158   :  { %1029 = vmatprep.subr.bf16.mxu1 %v1397_v31 }
 0x15b   :  { %1030 = vmatpush1.bf16.msra.mxu1 %v1395_v32 }
 0x1f1   :  { %v535_v19 = vpop.f32.mrb[0].mxu1 }
 0x1f2   :  { %v536_v20 = vadd.f32 %v535_v19, %v334_v17  ;;  %v537_v21 = vpop.f32.mrb[1].mxu1 }
 0x1f3   :  { %v538_v22 = vadd.f32 %v537_v21, %v338_v18  ;;  %v539_v23 = vpop.f32.mrb[2].mxu1 }
 0x1f4   :  { %v542_v24 = vmax.f32 %v536_v20, 0.0  ;;  %v540_v25 = vpop.f32.mrb[3].mxu1 }
 0x1f5   :  { %v543_v26 = vmax.f32 %v538_v22, 0.0 }
 0x1f6   :  { %v544_v28 = vpack.c.bf16 %v542_v24, %v542_v24 }
 0x1f7   :  { %v545_v27 = vpack.c.bf16 %v543_v26, %v543_v26 }
 0x1f9   :  { %782 = vmatprep.mubr.bf16.mxu0 %v545_v27 }
 0x1fa   :  { %783 = vmatmul.mubr.bf16.vlgmr.msra.gmra.mrb[4].mxu0 %v544_v28 }
 0x2cd   :  { %v784_v38 = vpop.f32.mrb[4].mxu0 }
 0x2ce   :  { %v785_v39 = vadd.f32 %v784_v38, %v583_v36  ;;  %v786_v40 = vpop.f32.mrb[5].mxu0 }
 0x2cf   :  { %v787_v41 = vadd.f32 %v786_v40, %v587_v37  ;;  %v788_v42 = vpop.f32.mrb[6].mxu0 }
 0x2d0   :  { %v791_v43 = vmax.f32 %v785_v39, 0.0  ;;  %v789_v44 = vpop.f32.mrb[7].mxu0 }
 0x2d1   :  { %v792_v45 = vmax.f32 %v787_v41, 0.0 }
 0x2d2   :  { %v793_v47 = vpack.c.bf16 %v791_v43, %v791_v43 }
 0x2d3   :  { %v794_v46 = vpack.c.bf16 %v792_v45, %v792_v45 }
 0x2d5   :  { %1031 = vmatprep.mubr.bf16.mxu1 %v794_v46 }
 0x2d6   :  { %1032 = vmatmul.mubr.bf16.vlgmr.msra.gmra.mrb[4].mxu1 %v793_v47 }
 0x3a9   :  { %v1033_v53 = vpop.f32.mrb[4].mxu1 }
 0x3aa   :  { %v1034_v54 = vadd.f32 %v1033_v53, %v832_v50  ;;  %v1035_v55 = vpop.f32.mrb[5].mxu1 }
 0x3ab   :  { %v1036_v57 = vadd.f32 %v1035_v55, %v836_v51  ;;  %v1037_v58 = vpop.f32.mrb[6].mxu1 }
 0x3ac   :  { %v1040_v60 = vmax.f32 %v1034_v54, 0.0  ;;  %v1038_v61 = vpop.f32.mrb[7].mxu1 }
 0x3ad   :  { %v1041_v62 = vmax.f32 %v1036_v57, 0.0 }
 0x3ae   :  { %v1054_v63 = vmul.f32 %v1047_v56, %v1040_v60 }
 0x3af   :  { %v1055_v0 = vmul.f32 %v1051_v59, %v1041_v62 }
 0x3b1   :  { %v1056_v1 = vadd.f32 %v1055_v0, %v1054_v63 }
 0x3b3   :  { %1057 = vadd.xlane.f32.xlu0 %v1056_v1 }
 0x440   :  { %v1058_v3 = vpop.xlane.xlu0 %1057 }
 0x441   :  { %v1066_v4 = vadd.f32 %v1203_v2, %v1058_v3 }
 0x443   :  { %1068 = vst.msk [vmem:[%s1897_s11] sm:$0xff] %vm1067_vm0, %v1066_v4 }

</bundles_post_ra>
